<compile_context>
chip_gen: v6e
topology: v6e:2x2x1
jax: 0.10.0
libtpu: 0.0.40
codegen_flags: <defaults>
</compile_context>

<pallas_src>
import functools
import math

import jax
import jax.numpy as jnp
from jax import lax
from jax.experimental import pallas as pl
from jax.experimental.pallas import tpu as pltpu


def _label_smoothing_kl_kernel(output_ref, target_ref, rowloss_ref, *,
                               smoothing_value, confidence, ent_conf,
                               sv_log_sv, zero_col, has_zero_col,
                               ignore_index, n_classes):
    out = output_ref[...].astype(jnp.float32)        # (TB, V) log-probs
    tgt = target_ref[...]                            # (TB, 1) int32
    tb, v = out.shape

    sv = jnp.float32(smoothing_value)
    conf = jnp.float32(confidence)

    valid = tgt != ignore_index                      # (TB, 1) masked_fill_ rows

    col = lax.broadcasted_iota(jnp.int32, (tb, v), 1)
    is_tgt = col == tgt                              # (TB, V)

    rowsum = jnp.sum(out, axis=-1, keepdims=True)                          # (TB, 1)
    out_tgt = jnp.sum(jnp.where(is_tgt, out, 0.0), axis=-1, keepdims=True)  # (TB, 1)

    if has_zero_col:
        out_zero = out[:, zero_col:zero_col + 1]                           # (TB, 1)
        tgt_is_zero = tgt == zero_col
        # sum_j p*out_j : sv everywhere, 0 at zero_col, conf at target
        # (the scatter overwrites the zeroed column when target == zero_col).
        cross = (sv * rowsum - sv * out_zero
                 + out_tgt * jnp.where(tgt_is_zero, conf, conf - sv))
        n_sv = jnp.where(tgt_is_zero,
                         jnp.float32(n_classes - 1), jnp.float32(n_classes - 2))
    else:
        # padding_idx falls outside the one_hot buffer: no zeroed column.
        cross = sv * rowsum + (conf - sv) * out_tgt
        n_sv = jnp.float32(n_classes - 1)

    ent = jnp.float32(ent_conf) + jnp.float32(sv_log_sv) * n_sv            # sum_j p*log p
    rowloss_ref[...] = jnp.where(valid, ent - cross, jnp.float32(0.0))


def _choose_tile_b(batch, n_classes, itemsize, budget_bytes=8 << 20):
    # Keep one (double-buffered) input block around ~8 MiB so the pipeline fits
    # the 32 MiB scoped-VMEM default on every generation (incl. v7x's 64 MiB).
    rows = budget_bytes // max(1, n_classes * itemsize)
    rows = min(rows, batch)
    rows = (rows // 8) * 8
    return max(8, rows)


def label_smoothing_loss(output, target, *, label_smoothing, tgt_vocab_size,
                         ignore_index=-100, tile_b=None):
    """output: (B, n_classes) float log-probs (f32 or bf16); target: (B,) int."""
    assert 0.0 < label_smoothing <= 1.0
    batch, n_classes = output.shape
    assert n_classes >= tgt_vocab_size, "kl_div requires n_classes >= tgt_vocab_size"

    smoothing_value = label_smoothing / (tgt_vocab_size - 2)
    confidence = 1.0 - label_smoothing
    zero_col = ignore_index if ignore_index >= 0 else ignore_index + tgt_vocab_size
    has_zero_col = 0 <= zero_col < tgt_vocab_size
    # (If has_zero_col is False the PyTorch module would index-error while
    #  building its one_hot buffer; here we simply skip the zeroed column.)

    itemsize = jnp.dtype(output.dtype).itemsize
    if tile_b is None:
        tile_b = _choose_tile_b(batch, n_classes, itemsize)
    num_tiles = -(-batch // tile_b)
    b_pad = num_tiles * tile_b

    target = target.astype(jnp.int32)
    if b_pad != batch:
        # Padded rows get target == ignore_index -> masked -> contribute 0.
        output = jnp.pad(output, ((0, b_pad - batch), (0, 0)))
        target = jnp.pad(target, (0, b_pad - batch), constant_values=ignore_index)
    target2d = target.reshape(b_pad, 1)

    kernel = functools.partial(
        _label_smoothing_kl_kernel,
        smoothing_value=float(smoothing_value),
        confidence=float(confidence),
        ent_conf=float(confidence * math.log(confidence)) if confidence > 0.0 else 0.0,
        sv_log_sv=float(smoothing_value * math.log(smoothing_value)),
        zero_col=int(zero_col),
        has_zero_col=bool(has_zero_col),
        ignore_index=int(ignore_index),
        n_classes=int(n_classes),
    )

    vmem_limit = int(min(
        120 << 20,
        max(32 << 20, (2 * itemsize + 2 * 4) * tile_b * n_classes + (2 << 20))))

    row_losses = pl.pallas_call(
        kernel,
        out_shape=jax.ShapeDtypeStruct((b_pad, 1), jnp.float32),
        grid=(num_tiles,),
        in_specs=[
            pl.BlockSpec((tile_b, n_classes), lambda i: (i, 0)),
            pl.BlockSpec((tile_b, 1), lambda i: (i, 0)),
        ],
        out_specs=pl.BlockSpec((tile_b, 1), lambda i: (i, 0)),
        compiler_params=pltpu.CompilerParams(
            dimension_semantics=("parallel",),
            vmem_limit_bytes=vmem_limit),
    )(output, target2d)
    return jnp.sum(row_losses)


def _reference_loss(output, target, *, label_smoothing, tgt_vocab_size,
                    ignore_index):
    # Pure-JAX mirror of the PyTorch forward (elementwise, with 0*log0 := 0).
    b, n = output.shape
    sv = label_smoothing / (tgt_vocab_size - 2)
    conf = 1.0 - label_smoothing
    zero_col = ignore_index if ignore_index >= 0 else ignore_index + tgt_vocab_size
    base = jnp.full((n,), sv, jnp.float32)
    if 0 <= zero_col < tgt_vocab_size:
        base = base.at[zero_col].set(0.0)
    prob = jnp.tile(base[None, :], (b, 1))
    prob = prob.at[jnp.arange(b), target].set(conf)
    prob = jnp.where((target == ignore_index)[:, None], 0.0, prob)
    safe = jnp.where(prob > 0.0, prob, 1.0)
    return jnp.sum(prob * (jnp.log(safe) - output.astype(jnp.float32)))


if __name__ == "__main__":
    key = jax.random.PRNGKey(0)

    # ---- Test 1: plain vocab (n_classes == tgt_vocab_size), positive padding idx.
    B, V = 16, 32
    LABEL_SMOOTHING = 0.1
    IGNORE_INDEX = 1
    k1, k2, k3, k4 = jax.random.split(key, 4)

    logits = jax.random.normal(k1, (B, V), dtype=jnp.float32)
    output = jax.nn.log_softmax(logits, axis=-1)
    target = jax.random.randint(k2, (B,), 0, V, dtype=jnp.int32)
    target = target.at[0].set(IGNORE_INDEX)        # exercise the padding mask

    loss = label_smoothing_loss(
        output, target, label_smoothing=LABEL_SMOOTHING,
        tgt_vocab_size=V, ignore_index=IGNORE_INDEX, tile_b=8)  # 2 grid tiles
    loss = jax.block_until_ready(loss)
    ref = _reference_loss(
        output, target, label_smoothing=LABEL_SMOOTHING,
        tgt_vocab_size=V, ignore_index=IGNORE_INDEX)
    assert jnp.allclose(loss, ref, rtol=3e-5, atol=1e-4), (loss, ref)

    # ---- Test 2: extended vocab (n_classes > tgt_vocab_size), negative padding
    #      idx, target hitting the zeroed column, and batch padding (12 -> 16).
    B2, VOC2, NC2 = 12, 32, 40
    IGN2 = -1                                      # zero_col = 31
    logits2 = jax.random.normal(k3, (B2, NC2), dtype=jnp.float32)
    output2 = jax.nn.log_softmax(logits2, axis=-1)
    target2 = jax.random.randint(k4, (B2,), 0, VOC2, dtype=jnp.int32)
    target2 = target2.at[0].set(IGN2)              # masked (padding) row
    target2 = target2.at[2].set(31)                # valid target == zeroed column

    loss2 = label_smoothing_loss(
        output2, target2, label_smoothing=LABEL_SMOOTHING,
        tgt_vocab_size=VOC2, ignore_index=IGN2, tile_b=8)
    loss2 = jax.block_until_ready(loss2)
    ref2 = _reference_loss(
        output2, target2, label_smoothing=LABEL_SMOOTHING,
        tgt_vocab_size=VOC2, ignore_index=IGN2)
    assert jnp.allclose(loss2, ref2, rtol=3e-5, atol=1e-4), (loss2, ref2)

    print("KERNEL_OK")
</pallas_src>

<mosaic_0001>
module attributes {stable_mosaic.version = 11 : i64} {
  func.func @_label_smoothing_kl_kernel(%arg0: i32, %arg1: memref<8x32xf32, #tpu.memory_space<vmem>>, %arg2: memref<8x1xi32, #tpu.memory_space<vmem>>, %arg3: memref<8x1xf32, #tpu.memory_space<vmem>>) attributes {dimension_semantics = [#tpu.dimension_semantics<parallel>], iteration_bounds = array<i64: 2>, scalar_prefetch = 0 : i64, scratch_operands = 0 : i64, tpu.core_type = #tpu.core_type<tc>, window_params = [{transform_indices = @transform_0, window_bounds = array<i64: 8, 32>}, {transform_indices = @transform_1, window_bounds = array<i64: 8, 1>}, {transform_indices = @transform_2, window_bounds = array<i64: 8, 1>}]} {
    %c0 = arith.constant 0 : index
    %c0_0 = arith.constant 0 : index
    %0 = vector.load %arg1[%c0, %c0_0] : memref<8x32xf32, #tpu.memory_space<vmem>>, vector<8x32xf32>
    %c0_1 = arith.constant 0 : index
    %c0_2 = arith.constant 0 : index
    %1 = vector.load %arg2[%c0_1, %c0_2] : memref<8x1xi32, #tpu.memory_space<vmem>>, vector<8x1xi32>
    %c1_i32 = arith.constant 1 : i32
    %2 = vector.broadcast %c1_i32 : i32 to vector<8x1xi32>
    %3 = arith.cmpi ne, %1, %2 : vector<8x1xi32>
    %4 = tpu.iota {dimensions = array<i32: 1>} : vector<8x32xi32>
    %5 = vector.broadcast %1 : vector<8x1xi32> to vector<8x32xi32>
    %6 = arith.cmpi eq, %4, %5 : vector<8x32xi32>
    %cst = arith.constant dense<0.000000e+00> : vector<8xf32>
    %7 = vector.multi_reduction <add>, %0, %cst [1] : vector<8x32xf32> to vector<8xf32>
    %8 = vector.shape_cast %7 : vector<8xf32> to vector<8x1xf32>
    %cst_3 = arith.constant 0.000000e+00 : f32
    %9 = vector.broadcast %cst_3 : f32 to vector<8x32xf32>
    %10 = arith.select %6, %0, %9 : vector<8x32xi1>, vector<8x32xf32>
    %cst_4 = arith.constant dense<0.000000e+00> : vector<8xf32>
    %11 = vector.multi_reduction <add>, %10, %cst_4 [1] : vector<8x32xf32> to vector<8xf32>
    %12 = vector.shape_cast %11 : vector<8xf32> to vector<8x1xf32>
    %13 = vector.extract_strided_slice %0 {offsets = [0, 1], sizes = [8, 1], strides = [1, 1]} : vector<8x32xf32> to vector<8x1xf32>
    %c1_i32_5 = arith.constant 1 : i32
    %14 = vector.broadcast %c1_i32_5 : i32 to vector<8x1xi32>
    %15 = arith.cmpi eq, %1, %14 : vector<8x1xi32>
    %cst_6 = arith.constant 0.00333333341 : f32
    %16 = vector.broadcast %cst_6 : f32 to vector<8x1xf32>
    %17 = arith.mulf %16, %8 : vector<8x1xf32>
    %cst_7 = arith.constant 0.00333333341 : f32
    %18 = vector.broadcast %cst_7 : f32 to vector<8x1xf32>
    %19 = arith.mulf %18, %13 : vector<8x1xf32>
    %20 = arith.subf %17, %19 : vector<8x1xf32>
    %cst_8 = arith.constant 0.899999976 : f32
    %cst_9 = arith.constant 0.00333333341 : f32
    %21 = arith.subf %cst_8, %cst_9 : f32
    %cst_10 = arith.constant 0.899999976 : f32
    %22 = vector.broadcast %cst_10 : f32 to vector<8x1xf32>
    %23 = vector.broadcast %21 : f32 to vector<8x1xf32>
    %24 = arith.select %15, %22, %23 : vector<8x1xi1>, vector<8x1xf32>
    %25 = arith.mulf %12, %24 : vector<8x1xf32>
    %26 = arith.addf %20, %25 : vector<8x1xf32>
    %cst_11 = arith.constant 3.100000e+01 : f32
    %cst_12 = arith.constant 3.000000e+01 : f32
    %27 = vector.broadcast %cst_11 : f32 to vector<8x1xf32>
    %28 = vector.broadcast %cst_12 : f32 to vector<8x1xf32>
    %29 = arith.select %15, %27, %28 : vector<8x1xi1>, vector<8x1xf32>
    %cst_13 = arith.constant -0.0190126076 : f32
    %30 = vector.broadcast %cst_13 : f32 to vector<8x1xf32>
    %31 = arith.mulf %30, %29 : vector<8x1xf32>
    %cst_14 = arith.constant -0.0948244631 : f32
    %32 = vector.broadcast %cst_14 : f32 to vector<8x1xf32>
    %33 = arith.addf %32, %31 : vector<8x1xf32>
    %34 = arith.subf %33, %26 : vector<8x1xf32>
    %cst_15 = arith.constant 0.000000e+00 : f32
    %35 = vector.broadcast %cst_15 : f32 to vector<8x1xf32>
    %36 = arith.select %3, %34, %35 : vector<8x1xi1>, vector<8x1xf32>
    %c0_16 = arith.constant 0 : index
    %c0_17 = arith.constant 0 : index
    %37 = vector.load %arg3[%c0_16, %c0_17] : memref<8x1xf32, #tpu.memory_space<vmem>>, vector<8x1xf32>
    tpu.vector_store %arg3[%c0_16, %c0_17], %36 {strides = array<i32>} : memref<8x1xf32, #tpu.memory_space<vmem>>, vector<8x1xf32>,
    return
  }
  func.func @transform_0(%arg0: i32) -> (i32, i32) {
    %c0_i32 = arith.constant 0 : i32
    %c0_i32_0 = arith.constant 0 : i32
    return %arg0, %c0_i32 : i32, i32
  }
  func.func @transform_1(%arg0: i32) -> (i32, i32) {
    %c0_i32 = arith.constant 0 : i32
    %c0_i32_0 = arith.constant 0 : i32
    return %arg0, %c0_i32 : i32, i32
  }
  func.func @transform_2(%arg0: i32) -> (i32, i32) {
    %c0_i32 = arith.constant 0 : i32
    %c0_i32_0 = arith.constant 0 : i32
    return %arg0, %c0_i32 : i32, i32
  }
}

</mosaic_0001>

<bundles_post_ra>
// kernel: tpu_custom_call.1
= control target key start
LH: loop header
LB: loop body
LE: loop exit
PB: predicated region body
PF: predicated region fallthrough
CT: control target
= control target key end

     0   :  { %s312_s9 = smov 0   ;;  %s339_s0 = inlined_call_operand.vmem [shape: f32[16,32], index: 0, kind: input, shape index: {}]   ;;  %s340_s1 = inlined_call_operand.vmem [shape: s32[16,1], index: 1, kind: input, shape index: {}]   ;;  %s341_s2 = inlined_call_operand.vmem [shape: f32[16,1], index: 2, kind: output, shape index: {}]  }
   0x1 LB: > { %s260_s10 = sadd.s32 4294967295, %s290_s9   ;;  %p264_p0 = scmp.ge.s32.totalorder %s290_s9, 1  ;;  %s290_s9 = sphi %s312_s9, %s12_s9  }
   0x2   : > { %p120_p1 = scmp.lt.s32.totalorder %s290_s9, 3 }
   0x4   : > { %p121_p2 = pnand %p264_p0, %p120_p1 }
   0x5   : > { %p144_p3 = scmp.lt.s32.totalorder (!%p121_p2), %s260_s10, 1  ;;  %s294_s18 = smov (!%p121_p2), 1  }
   0x6   : > { %124 = sbr.rel (%p121_p2) target bundleno = 518 (0x206), region = 28  ;;  %s295_s19 = smov (!%p121_p2), 127  }
   0xb   : > { %v292_v0 = vmov 0   ;;  %s343_s10 = smov (!%p144_p3, %s260_s10), 1  ;;  %vm165_vm0 = vcmask 261120   ;;  %v159_v4 = vlaneseq  ;;  %v293_v9 = vmov 0.89666665  }
   0xc   : > { %283 = vset.pattern.permute.xlu0 %v292_v0  ;;  %s320_s11 = sshll.u32 %s343_s10, 3  ;;  %v296_v19 = vmov 30.0   ;;  %vm193_vm4 = vcmask 7168  }
   0xd   : > { %s151_s14 = scalar_lea.vmem %s340_s1, %s320_s11  ;;  %s147_s17 = scalar_lea.vmem %s339_s0, %s320_s11  ;;  %v160_v5 = vand.u32 127, %v159_v4 }
   0xe   : > { %v157_v1 = vld [vmem:[%s151_s14] sm:$0xff]  ;;  %s155_s22 = scalar_lea.vmem %s341_s2, %s320_s11 }
   0xf   : > { %162 = vperm.xlu0 %283, %v157_v1   ;;  %v156_v2 = vld [vmem:[%s147_s17] sm:$0xff]  ;;  %vm173_vm2 = vcmp.eq.s32.totalorder %v157_v1, 1  ;;  %vm158_vm3 = vcmp.ne.s32.totalorder %v157_v1, 1 }
  0x10   : > { %v166_v3 = vsel %vm165_vm0, %v156_v2, 0.0  ;;  %v177_v10 = vsel %vm173_vm2, 0.9, %v293_v9  ;;  %v175_v15 = vmul.f32 0.0033333334, %v156_v2  ;;  %v184_v20 = vsel %vm173_vm2, 31.0, %v296_v19 }
  0x11   : > { %167 = vadd.xlane.f32.xlu1 %v166_v3  ;;  %v185_v21 = vmul.f32 -0.019012608, %v184_v20 }
  0x13   : > { %v186_v22 = vadd.f32 -0.09482446, %v185_v21 }
  0x8a   : > { %v163_v6 = vpop.permute.xlu0 %162 }
  0x8b   : > { %vm164_vm1 = vcmp.eq.s32.totalorder %v160_v5, %v163_v6 }
  0x8c   : > { %v169_v7 = vsel %vm164_vm1, %v156_v2, 0.0 }
  0x8d   : > { %v170_v8 = vsel %vm165_vm0, %v169_v7, 0.0 }
  0x8e   : > { %171 = vadd.xlane.f32.xlu0 %v170_v8 }
  0x9a   : > { %v168_v13 = vpop.xlane.xlu1 %167 }
  0x9b   : > { %v174_v14 = vmul.f32 0.0033333334, %v168_v13 }
  0x9d   : > { %v176_v16 = vsub.f32 %v174_v14, %v175_v15 }
 0x117   : > { %v172_v11 = vpop.xlane.xlu0 %171 }
 0x118   : > { %v178_v12 = vmul.f32 %v177_v10, %v172_v11 }
 0x11a   : > { %180 = vrot.lane.b32.xlu1 %v178_v12, %s294_s18 }
 0x18c   : > { %v181_v17 = vpop.permute.xlu1 %180 }
 0x18d   : > { %v183_v18 = vadd.f32 %v181_v17, %v176_v16 }
 0x18f   : > { %188 = vrot.lane.b32.xlu1 %v183_v18, %s295_s19 }
 0x201   : > { %v189_v23 = vpop.permute.xlu1 %188 }
 0x202   : > { %v191_v24 = vsub.f32 %v186_v22, %v189_v23 }
 0x204   : > { %v192_v25 = vsel %vm158_vm3, %v191_v24, 0.0 }
 0x205   : > { %194 = vst.msk [vmem:[%s155_s22] sm:$0xff] %vm193_vm4, %v192_v25 }
 0x206 PF: > { %s12_s9 = sadd.s32 1, %s290_s9  }
 0x207   : > { %p9_p4 = scmp.ge.s32.totalorder %s12_s9, 4  }
 0x209   :  { %11 = sbr.rel (!%p9_p4) target bundleno = 1 (0x1), region = 61 }

</bundles_post_ra>
